<compile_context>
chip_gen: v7x
topology: tpu7x:2x2x1
jax: 0.10.0
libtpu: 0.0.40
codegen_flags: <defaults>
</compile_context>

<pallas_src>
import numpy as np
import jax
import jax.numpy as jnp
from jax.experimental import pallas as pl
from jax.experimental.pallas import tpu as pltpu


def _round_up(x, m):
    return ((x + m - 1) // m) * m


def ema_kernel(w_ref, x_ref, o_ref):
    # w_ref: (T, T)       folded lower-triangular EMA operator (grid-invariant)
    # x_ref: (T, tile_n)  lane-dense slab of the input (time major, lanes = B*C)
    # o_ref: (T, tile_n)  float32 output slab
    o_ref[...] = jnp.dot(
        w_ref[...], x_ref[...], preferred_element_type=jnp.float32
    ).astype(o_ref.dtype)


def _ema_matrix(t, alpha):
    """Folded EMA operator in float64: out = W @ x along time."""
    idx = np.arange(t)
    diff = idx[:, None] - idx[None, :]                     # i - j
    w = np.where(diff >= 0,
                 np.power(1.0 - alpha, np.maximum(diff, 0).astype(np.float64)),
                 0.0)
    if t > 1:
        w[:, 1:] *= alpha                                  # columns j >= 1
    return w                                               # entries in [0, 1]


def ema_forward(x, alpha, *, tile_n=512, matmul_dtype=jnp.float32):
    # matmul_dtype=jnp.bfloat16 runs the MXU at native rate on v5e/v6e at the
    # cost of ~2^-8 relative precision on the folded weights; f32 by default.
    B, T, C = x.shape
    N = B * C
    itemsize = jnp.dtype(matmul_dtype).itemsize

    w = jnp.asarray(_ema_matrix(T, alpha), dtype=matmul_dtype)

    # Lane-dense layout: (B, T, C) -> (T, B*C); pad lanes up to a tile multiple.
    xt = jnp.transpose(x, (1, 0, 2)).reshape(T, N).astype(matmul_dtype)
    tile_n = min(tile_n, _round_up(N, 128))

    # Shrink tile_n if the double-buffered working set would blow the scoped
    # VMEM budget (conservative 48 MiB target, fits v7x's 64 MiB physical).
    vmem_budget = 48 << 20
    bytes_w = T * T * itemsize

    def working_set(tn):
        return bytes_w + 2 * (T * tn * itemsize + T * tn * 4)

    while tile_n > 128 and working_set(tile_n) > vmem_budget:
        tile_n //= 2
    tile_n = max(tile_n, 128)

    n_pad = _round_up(N, tile_n)
    if n_pad != N:
        xt = jnp.pad(xt, ((0, 0), (0, n_pad - N)))

    vmem_limit = int(min(64 << 20,
                         max(32 << 20, working_set(tile_n) + (1 << 20))))

    out = pl.pallas_call(
        ema_kernel,
        out_shape=jax.ShapeDtypeStruct((T, n_pad), jnp.float32),
        grid_spec=pltpu.PrefetchScalarGridSpec(
            num_scalar_prefetch=0,
            grid=(n_pad // tile_n,),
            in_specs=[
                pl.BlockSpec((T, T), lambda n: (0, 0)),      # constant block
                pl.BlockSpec((T, tile_n), lambda n: (0, n)),
            ],
            out_specs=pl.BlockSpec((T, tile_n), lambda n: (0, n)),
        ),
        compiler_params=pltpu.CompilerParams(
            dimension_semantics=("parallel",),
            vmem_limit_bytes=vmem_limit),
        cost_estimate=pl.CostEstimate(
            flops=2 * T * T * n_pad,
            transcendentals=0,
            bytes_accessed=bytes_w + T * n_pad * itemsize + T * n_pad * 4),
    )(w, xt)

    # Back to (B, T, C), dropping the lane padding.
    return out[:, :N].reshape(T, B, C).transpose(1, 0, 2)


def ema_reference(x, alpha):
    # Pure-JAX reference mirroring the torch forward (f64 weights, f32 math).
    B, T, C = x.shape
    powers = np.arange(T, dtype=np.float64)[::-1]
    weights = np.power(1.0 - alpha, powers)
    divisor = weights.copy()
    weights = weights.copy()
    if T > 1:
        weights[1:] = weights[1:] * alpha
    w = jnp.asarray(weights.reshape(1, T, 1), dtype=jnp.float32)
    d = jnp.asarray(divisor.reshape(1, T, 1), dtype=jnp.float32)
    return (jnp.cumsum(x.astype(jnp.float32) * w, axis=1) / d).astype(jnp.float32)


if __name__ == "__main__":
    B, T, C = 2, 8, 16
    alpha = 0.3
    key = jax.random.PRNGKey(0)
    x = jax.random.normal(key, (B, T, C), dtype=jnp.float32)

    out = jax.block_until_ready(ema_forward(x, alpha))
    ref = ema_reference(x, alpha)
    np.testing.assert_allclose(np.asarray(out), np.asarray(ref),
                               rtol=1e-5, atol=1e-5)
    print("KERNEL_OK")
</pallas_src>

<mosaic_0001>
module attributes {stable_mosaic.version = 11 : i64} {
  func.func @ema_kernel(%arg0: i32, %arg1: memref<8x8xf32, #tpu.memory_space<vmem>>, %arg2: memref<8x128xf32, #tpu.memory_space<vmem>>, %arg3: memref<8x128xf32, #tpu.memory_space<vmem>>) attributes {dimension_semantics = [#tpu.dimension_semantics<parallel>], iteration_bounds = array<i64: 1>, scalar_prefetch = 0 : i64, scratch_operands = 0 : i64, tpu.core_type = #tpu.core_type<tc>, window_params = [{pipeline_mode = #tpu.pipeline_mode<synchronous>, transform_indices = @transform_0, window_bounds = array<i64: 8, 8>}, {transform_indices = @transform_1, window_bounds = array<i64: 8, 128>}, {transform_indices = @transform_2, window_bounds = array<i64: 8, 128>}]} {
    %c0 = arith.constant 0 : index
    %c0_0 = arith.constant 0 : index
    %0 = vector.load %arg1[%c0, %c0_0] : memref<8x8xf32, #tpu.memory_space<vmem>>, vector<8x8xf32>
    %c0_1 = arith.constant 0 : index
    %c0_2 = arith.constant 0 : index
    %1 = vector.load %arg2[%c0_1, %c0_2] : memref<8x128xf32, #tpu.memory_space<vmem>>, vector<8x128xf32>
    %cst = arith.constant dense<0.000000e+00> : vector<8x128xf32>
    %2 = tpu.matmul %0, %1, %cst {dimension_numbers = #tpu.dot_dimension_numbers<[1], [0], [0], [1], [0, 0, 1, 1], [], []>} : vector<8x8xf32>, vector<8x128xf32>, vector<8x128xf32> -> vector<8x128xf32>
    %c0_3 = arith.constant 0 : index
    %c0_4 = arith.constant 0 : index
    %3 = vector.load %arg3[%c0_3, %c0_4] : memref<8x128xf32, #tpu.memory_space<vmem>>, vector<8x128xf32>
    tpu.vector_store %arg3[%c0_3, %c0_4], %2 {strides = array<i32>} : memref<8x128xf32, #tpu.memory_space<vmem>>, vector<8x128xf32>,
    return
  }
  func.func @transform_0(%arg0: i32) -> (i32, i32) {
    %c0_i32 = arith.constant 0 : i32
    %c0_i32_0 = arith.constant 0 : i32
    %c0_i32_1 = arith.constant 0 : i32
    return %c0_i32, %c0_i32_0 : i32, i32
  }
  func.func @transform_1(%arg0: i32) -> (i32, i32) {
    %c0_i32 = arith.constant 0 : i32
    %c0_i32_0 = arith.constant 0 : i32
    return %c0_i32, %arg0 : i32, i32
  }
  func.func @transform_2(%arg0: i32) -> (i32, i32) {
    %c0_i32 = arith.constant 0 : i32
    %c0_i32_0 = arith.constant 0 : i32
    return %c0_i32, %arg0 : i32, i32
  }
}

</mosaic_0001>

<bundles_post_ra>
// kernel: tpu_custom_call.1
= control target key start
LH: loop header
LB: loop body
LE: loop exit
PB: predicated region body
PF: predicated region fallthrough
CT: control target
= control target key end

     0   :  { %7 = vsyncpa [#allocation3], 0  ;;  %s270_s0 = inlined_call_operand.hbm [shape: f32[8,8], index: 0, kind: input, shape index: {}]   ;;  %s271_s1 = inlined_call_operand.hbm [shape: f32[8,128], index: 1, kind: input, shape index: {}]   ;;  %s272_s2 = inlined_call_operand.hbm [shape: f32[8,128], index: 2, kind: output, shape index: {}]  }
   0x1   :  { %8 = vsyncpa [#allocation6], 0 }
   0x2   :  { %9 = vsyncpa [#allocation4], 0  ;;  %s214_s9 = smov [#allocation2]   ;;  %s215_s11 = smov [#allocation5]  }
   0x3   :  { %s16_s10 = sshll.u32 %s214_s9, 4  ;;  %s26_s12 = sshll.u32 %s215_s11, 4  ;;  %s17_s10 = int_to_ptr.vmem [resolvable:$true] %s16_s10  ;;  %s27_s12 = int_to_ptr.vmem [resolvable:$true] %s26_s12 }
   0x4   :  { %s142_s15 = scalar_lea.hbm %s270_s0, 128 }
   0x5   :  { %p143_p0 = scmp.ne.s32.totalorder %s270_s0, %s142_s15  ;;  %p146_p1 = scmp.lt.u32.totalorder %s142_s15, %s270_s0 }
   0x7   :  { %p148_p2 = pnand %p146_p1, %p143_p0 }
   0x9   :  { %151 = shalt.err (!%p148_p2)
}
   0xa   :  { %s152_s20 = scalar_lea.vmem %s17_s10, 128  ;;  %p157_p4 = scmp.lt.s32.totalorder %s17_s10, %s17_s10 }
   0xb   :  { %p153_p3 = scmp.ne.s32.totalorder %s17_s10, %s152_s20  ;;  %p158_p5 = scmp.lt.s32.totalorder %s152_s20, %s152_s20 }
   0xd   :  { %p159_p6 = por %p158_p5, %p157_p4 }
   0xf   :  { %p160_p7 = pnand %p159_p6, %p153_p3 }
  0x11   :  { %163 = shalt.err (!%p160_p7)
}
  0x12   :  { %19 = dma.hbm_to_vmem [thread:$0]  %s270_s0, 128, %s17_s10, [#allocation3]  }
  0x13   :  { %s164_s25 = scalar_lea.hbm %s271_s1, 128 }
  0x14   :  { %p165_p8 = scmp.ne.s32.totalorder %s271_s1, %s164_s25  ;;  %p168_p9 = scmp.lt.u32.totalorder %s164_s25, %s271_s1 }
  0x16   :  { %p170_p10 = pnand %p168_p9, %p165_p8 }
  0x18   :  { %173 = shalt.err (!%p170_p10)
}
  0x19   :  { %s174_s30 = scalar_lea.vmem %s27_s12, 128  ;;  %p179_p12 = scmp.lt.s32.totalorder %s27_s12, %s27_s12 }
  0x1a   :  { %p175_p11 = scmp.ne.s32.totalorder %s27_s12, %s174_s30  ;;  %p180_p13 = scmp.lt.s32.totalorder %s174_s30, %s174_s30 }
  0x1c   :  { %p181_p0 = por %p180_p13, %p179_p12 }
  0x1e   :  { %p182_p1 = pnand %p181_p0, %p175_p11 }
  0x20   :  { %185 = shalt.err (!%p182_p1)
}
  0x21   :  { %29 = dma.hbm_to_vmem [thread:$0]  %s271_s1, 128, %s27_s12, [#allocation6]  }
  0x22   :  { %208 = dma.done.wait [#allocation3], 128  }
  0x23   :  { %209 = vsyncadd [#allocation3], 4294967168 }
  0x24   :  { %210 = dma.done.wait [#allocation6], 128  }
  0x25   :  { %211 = vsyncadd [#allocation6], 4294967168  ;;  %v216_v0 = vmov 0.0   ;;  %vm217_vm0 = vmmov 0   ;;  %vm38_vm1 = vcmask 64512   ;;  %v37_v1 = vld [vmem:[#allocation5] sm:$0xff] }
  0x26   :  { %132 = vmatprep.subr.mxu0 %v216_v0  ;;  %134 = vmatprep.mubr.msk.f32.mxu0 %vm217_vm0, %v216_v0  ;;  %v36_v2 = vld [vmem:[#allocation2] sm:$0xff]  ;;  %s218_s4 = smov [#allocation7]  }
  0x27   :  { %133 = vmatpush3.msra.mxu0 %v37_v1  ;;  %s119_s5 = sshll.u32 %s218_s4, 4  ;;  %s120_s5 = int_to_ptr.vmem [resolvable:$true] %s119_s5 }
  0x28   :  { %135 = vmatmul.mubr.msk.f32.vlgmr.msra.gmra.mrb[0].mxu0 %vm38_vm1, %v36_v2  ;;  %s186_s1 = scalar_lea.vmem %s120_s5, 128  ;;  %p191_p3 = scmp.lt.s32.totalorder %s120_s5, %s120_s5 }
  0x29   :  { %p187_p2 = scmp.ne.s32.totalorder %s120_s5, %s186_s1  ;;  %p192_p4 = scmp.lt.s32.totalorder %s186_s1, %s186_s1 }
  0x2b   :  { %p193_p5 = por %p192_p4, %p191_p3 }
  0x2d   :  { %p194_p6 = pnand %p193_p5, %p187_p2 }
  0xfb   :  { %v108_v3 = vpop.f32.mrb[0].mxu0 }
  0xfc   :  { %112 = vst [vmem:[#allocation7] sm:$0xff] %v108_v3  ;;  %v136_v4 = vpop.f32.mrb[1].mxu0 }
  0xfd   :  { %197 = shalt.err (!%p194_p6)
}
  0xfe   :  { %s198_s8 = scalar_lea.hbm %s272_s2, 128 }
  0xff   :  { %p199_p7 = scmp.ne.s32.totalorder %s272_s2, %s198_s8  ;;  %p202_p8 = scmp.lt.u32.totalorder %s198_s8, %s272_s2 }
 0x101   :  { %p204_p9 = pnand %p202_p8, %p199_p7 }
 0x103   :  { %207 = shalt.err (!%p204_p9)
}
 0x104   :  { %122 = dma.vmem_to_hbm [thread:$0]  %s120_s5, 128, %s272_s2, [#allocation4]  }
 0x105   :  { %212 = dma.done.wait [#allocation4], 128  }
 0x106   :  { %213 = vsyncadd [#allocation4], 4294967168 }
 0x107   :  { %126 = vsyncpa [#allocation3], 1 }
 0x108   :  { %127 = vsyncpa [#allocation6], 1 }
 0x109   :  { %128 = vsyncpa [#allocation4], 1 }

</bundles_post_ra>
